<compile_context>
chip_gen: v7x
topology: tpu7x:2x2x1
jax: 0.10.0
libtpu: 0.0.40
codegen_flags: <defaults>
</compile_context>

<pallas_src>
import functools

import jax
import jax.numpy as jnp
import numpy as np
from jax.experimental import pallas as pl
from jax.experimental.pallas import tpu as pltpu

ID_DIM, EXP_DIM, TEX_DIM, ANGLE_DIM, GAMMA_DIM, TRANS_DIM = 80, 64, 80, 3, 27, 3
COEFF_DIM = ID_DIM + EXP_DIM + TEX_DIM + ANGLE_DIM + GAMMA_DIM + TRANS_DIM  # 257
TRANS_PARAMS_DIM = 5
OUT_DIM = COEFF_DIM + TRANS_PARAMS_DIM  # 262


def _round_up(x, m):
    return (x + m - 1) // m * m


def coeff_kernel(p_ref, wconv_ref, bconv_ref, wfc_ref, bfc_ref, o_ref, acc_ref,
                 *, hw_valid, inv_hw, needs_mask):
    """Fused im2col'd 3x3 conv + ReLU + global-avg-pool (tiled over HW) + FC.

    p_ref:     (bt, hwt, K)       im2col patch tile (K = 9*C, unpadded in HBM)
    wconv_ref: (K, CPAD)          flattened conv weights
    bconv_ref: (1, CPAD)          conv bias (f32)
    wfc_ref:   (CPAD, OUTPAD)     FC weights (output padded to 384 lanes)
    bfc_ref:   (1, OUTPAD)        FC bias (f32)
    o_ref:     (bt, 1, OUTPAD)    padded coefficient rows (first 257 valid)
    acc_ref:   (bt, CPAD) f32     running pooled-sum accumulator (scratch)
    """
    h = pl.program_id(1)
    nh = pl.num_programs(1)
    bt, hwt, k = p_ref.shape
    cpad = wconv_ref.shape[-1]

    @pl.when(h == 0)
    def _():
        acc_ref[...] = jnp.zeros_like(acc_ref)

    # One MXU matmul per spatial tile for all bt images of the tile.
    patches = p_ref[...].reshape(bt * hwt, k)
    act = jnp.dot(patches, wconv_ref[...], preferred_element_type=jnp.float32)
    # Bias + ReLU in f32 on the VPU (v5e has no bf16 VPU).
    act = jnp.maximum(act + bconv_ref[...], 0.0)
    act = act.reshape(bt, hwt, cpad)

    if needs_mask:
        # Zero out padded spatial rows so they don't pollute the pooled sum.
        r = jax.lax.broadcasted_iota(jnp.int32, (1, hwt, 1), 1)
        act = jnp.where(h * hwt + r < hw_valid, act, 0.0)

    # Per-tile partial pooled sum (XLU sublane reduction), accumulated in f32.
    acc_ref[...] += act.sum(axis=1)

    @pl.when(h == nh - 1)
    def _():
        pooled = acc_ref[...] * inv_hw                              # (bt, CPAD) f32
        coeff = jnp.dot(pooled.astype(wfc_ref.dtype), wfc_ref[...],
                        preferred_element_type=jnp.float32) + bfc_ref[...]
        o_ref[...] = coeff.reshape(o_ref.shape).astype(o_ref.dtype)


def coeff_detector_forward(img_nchw, trans_params, params,
                           compute_dtype=jnp.bfloat16, hwt=None):
    """img_nchw: (B, 3, H, W) float32 aligned image in [0, 1].
    trans_params: (B, 5) float32.  Returns coeff_3dmm: (B, 262) float32.

    compute_dtype: matmul-operand dtype (bf16 default; accumulation is f32).
    hwt: optional spatial-tile override (rows of HW per grid step).
    """
    wconv, bconv, wfc, bfc = params        # (9,C,Cout) (1,Cout) (Cout,257) (1,257)
    B, C, H, W = img_nchw.shape
    cout = wconv.shape[-1]
    HW = H * W
    K = 9 * C

    # ---- im2col in the wrapper (tap-major K = tap*C + c) ----
    x = jnp.transpose(img_nchw, (0, 2, 3, 1))                       # NCHW -> NHWC
    xp = jnp.pad(x, ((0, 0), (1, 1), (1, 1), (0, 0)))               # spatial pad 1
    taps = [xp[:, dy:dy + H, dx:dx + W, :]
            for dy in range(3) for dx in range(3)]
    patches = jnp.concatenate(taps, axis=-1).reshape(B, HW, K).astype(compute_dtype)

    CPAD = _round_up(max(cout, 128), 128)
    OUTPAD = _round_up(COEFF_DIM, 128)                              # 384

    # ---- batch tiling: >=2 parallel grid steps whenever B >= 2 (v7x megacore) ----
    bt = min(8, pl.cdiv(B, 2))
    Bp = pl.cdiv(B, bt) * bt

    # ---- spatial tiling: double-buffered patch tile ~<= 8 MiB of VMEM ----
    itemsize = jnp.dtype(compute_dtype).itemsize
    if hwt is None:
        rows_per_buf = (4 << 20) // (128 * itemsize)                # ~4 MiB / buffer
        hwt = min(_round_up(HW, 16),
                  max(512, (rows_per_buf // bt) // 512 * 512))
    hwt = _round_up(max(int(hwt), 16), 16)
    HWpad = pl.cdiv(HW, hwt) * hwt
    needs_mask = HWpad != HW

    if Bp != B or HWpad != HW:
        patches = jnp.pad(patches, ((0, Bp - B), (0, HWpad - HW), (0, 0)))

    wconv_flat = jnp.pad(wconv.reshape(K, cout),
                         ((0, 0), (0, CPAD - cout))).astype(compute_dtype)
    bconv_p = jnp.pad(bconv, ((0, 0), (0, CPAD - cout))).astype(jnp.float32)
    wfc_p = jnp.pad(wfc, ((0, CPAD - cout),
                          (0, OUTPAD - COEFF_DIM))).astype(compute_dtype)
    bfc_p = jnp.pad(bfc, ((0, 0), (0, OUTPAD - COEFF_DIM))).astype(jnp.float32)

    grid = (Bp // bt, HWpad // hwt)

    flops = 2 * Bp * HWpad * K * CPAD + 2 * Bp * CPAD * OUTPAD
    bytes_accessed = (Bp * HWpad * K * itemsize                     # patches (dominant)
                      + K * CPAD * itemsize + CPAD * OUTPAD * itemsize
                      + (CPAD + OUTPAD) * 4
                      + Bp * OUTPAD * 4)
    cost = pl.CostEstimate(flops=int(flops), transcendentals=0,
                           bytes_accessed=int(bytes_accessed))

    out = pl.pallas_call(
        functools.partial(coeff_kernel, hw_valid=HW, inv_hw=1.0 / HW,
                          needs_mask=needs_mask),
        out_shape=jax.ShapeDtypeStruct((Bp, 1, OUTPAD), jnp.float32),
        grid=grid,
        in_specs=[
            pl.BlockSpec((bt, hwt, K), lambda b, h: (b, h, 0)),
            pl.BlockSpec((K, CPAD), lambda b, h: (0, 0)),
            pl.BlockSpec((1, CPAD), lambda b, h: (0, 0)),
            pl.BlockSpec((CPAD, OUTPAD), lambda b, h: (0, 0)),
            pl.BlockSpec((1, OUTPAD), lambda b, h: (0, 0)),
        ],
        out_specs=pl.BlockSpec((bt, 1, OUTPAD), lambda b, h: (b, 0, 0)),
        scratch_shapes=[pltpu.VMEM((bt, CPAD), jnp.float32)],
        compiler_params=pltpu.CompilerParams(
            dimension_semantics=("parallel", "arbitrary"),
            vmem_limit_bytes=32 * 1024 * 1024),
        cost_estimate=cost,
    )(patches, wconv_flat, bconv_p, wfc_p, bfc_p)

    # concat order matches: id | exp | tex | angle | gamma | trans | trans_params
    coeff = out[:B, 0, :COEFF_DIM]
    return jnp.concatenate([coeff, trans_params.astype(jnp.float32)], axis=-1)


def reference_forward(img_nchw, trans_params, params):
    """Pure-JAX f32 reference of the same synthetic head."""
    wconv, bconv, wfc, bfc = params
    B, C, H, W = img_nchw.shape
    x = jnp.transpose(img_nchw, (0, 2, 3, 1))
    xp = jnp.pad(x, ((0, 0), (1, 1), (1, 1), (0, 0)))
    acc = jnp.zeros((B, H * W, wconv.shape[-1]), jnp.float32)
    for tap in range(9):
        dy, dx = tap // 3, tap % 3
        patch = xp[:, dy:dy + H, dx:dx + W, :].reshape(B, H * W, C)
        acc += jnp.einsum('bpc,co->bpo', patch, wconv[tap])
    acc = jnp.maximum(acc + bconv, 0.0)
    pooled = acc.mean(axis=1)
    coeff = pooled @ wfc + bfc
    return jnp.concatenate([coeff, trans_params], axis=-1)


if __name__ == "__main__":
    key = jax.random.PRNGKey(0)
    k1, k2, k3, k4, k5, k6, k7, k8 = jax.random.split(key, 8)

    C, COUT = 3, 32                  # RGB input, synthetic hidden width

    wconv = jax.random.normal(k3, (9, C, COUT), jnp.float32) * 0.1
    bconv = jax.random.normal(k4, (1, COUT), jnp.float32) * 0.1
    wfc = jax.random.normal(k5, (COUT, COEFF_DIM), jnp.float32) * 0.1
    bfc = jax.random.normal(k6, (1, COEFF_DIM), jnp.float32) * 0.1
    params = (wconv, bconv, wfc, bfc)

    # --- test 1: basic aligned-size input, f32 operands (tight check) ---
    B, H, W = 2, 16, 16
    img = jax.random.uniform(k1, (B, C, H, W), jnp.float32)
    tp = jax.random.normal(k2, (B, TRANS_PARAMS_DIM), jnp.float32)
    out = coeff_detector_forward(img, tp, params, compute_dtype=jnp.float32)
    jax.block_until_ready(out)
    assert out.shape == (B, OUT_DIM)
    ref = reference_forward(img, tp, params)
    np.testing.assert_allclose(np.asarray(out), np.asarray(ref),
                               rtol=1e-4, atol=1e-4)

    # --- test 2: ragged spatial size (mask path) + padded batch, f32 ---
    B2, H2, W2 = 3, 12, 10
    img2 = jax.random.uniform(k7, (B2, C, H2, W2), jnp.float32)
    tp2 = jax.random.normal(k8, (B2, TRANS_PARAMS_DIM), jnp.float32)
    out2 = coeff_detector_forward(img2, tp2, params, compute_dtype=jnp.float32)
    jax.block_until_ready(out2)
    ref2 = reference_forward(img2, tp2, params)
    np.testing.assert_allclose(np.asarray(out2), np.asarray(ref2),
                               rtol=1e-4, atol=1e-4)

    # --- test 3: multi-step HW reduction (accumulator across grid steps), f32 ---
    out3 = coeff_detector_forward(img, tp, params,
                                  compute_dtype=jnp.float32, hwt=64)
    jax.block_until_ready(out3)
    np.testing.assert_allclose(np.asarray(out3), np.asarray(ref),
                               rtol=1e-4, atol=1e-4)

    # --- test 4: default bf16-operand path (f32 accumulation), loose check ---
    out4 = coeff_detector_forward(img, tp, params)
    jax.block_until_ready(out4)
    np.testing.assert_allclose(np.asarray(out4), np.asarray(ref),
                               rtol=3e-2, atol=3e-2)

    # crop_img equivalent of the original return dict (uint8 HWC image).
    crop_img = (jnp.transpose(img, (0, 2, 3, 1)) * 255.0).astype(jnp.uint8)
    result = {'coeff_3dmm': out4, 'crop_img': crop_img}
    jax.block_until_ready(result['crop_img'])

    print("KERNEL_OK")
</pallas_src>

<mosaic_0001>
module attributes {stable_mosaic.version = 11 : i64} {
  func.func @coeff_kernel(%arg0: i32, %arg1: i32, %arg2: memref<1x256x27xf32, #tpu.memory_space<vmem>>, %arg3: memref<27x128xf32, #tpu.memory_space<vmem>>, %arg4: memref<1x128xf32, #tpu.memory_space<vmem>>, %arg5: memref<128x384xf32, #tpu.memory_space<vmem>>, %arg6: memref<1x384xf32, #tpu.memory_space<vmem>>, %arg7: memref<1x1x384xf32, #tpu.memory_space<vmem>>, %arg8: memref<1x128xf32, #tpu.memory_space<vmem>>) attributes {dimension_semantics = [#tpu.dimension_semantics<parallel>, #tpu.dimension_semantics<arbitrary>], iteration_bounds = array<i64: 2, 1>, scalar_prefetch = 0 : i64, scratch_operands = 1 : i64, tpu.core_type = #tpu.core_type<tc>, window_params = [{transform_indices = @transform_0, window_bounds = array<i64: 1, 256, 27>}, {pipeline_mode = #tpu.pipeline_mode<synchronous>, transform_indices = @transform_1, window_bounds = array<i64: 27, 128>}, {pipeline_mode = #tpu.pipeline_mode<synchronous>, transform_indices = @transform_2, window_bounds = array<i64: 1, 128>}, {pipeline_mode = #tpu.pipeline_mode<synchronous>, transform_indices = @transform_3, window_bounds = array<i64: 128, 384>}, {pipeline_mode = #tpu.pipeline_mode<synchronous>, transform_indices = @transform_4, window_bounds = array<i64: 1, 384>}, {transform_indices = @transform_5, window_bounds = array<i64: 1, 1, 384>}]} {
    %c0_i32 = arith.constant 0 : i32
    %0 = arith.cmpi eq, %arg1, %c0_i32 : i32
    %1 = arith.extui %0 : i1 to i32
    %c0_i32_0 = arith.constant 0 : i32
    %2 = arith.cmpi ne, %1, %c0_i32_0 : i32
    scf.if %2 {
      %cst_15 = arith.constant 0.000000e+00 : f32
      %20 = vector.broadcast %cst_15 : f32 to vector<1x128xf32>
      %c0_16 = arith.constant 0 : index
      %c0_17 = arith.constant 0 : index
      %21 = vector.load %arg8[%c0_16, %c0_17] : memref<1x128xf32, #tpu.memory_space<vmem>>, vector<1x128xf32>
      tpu.vector_store %arg8[%c0_16, %c0_17], %20 {strides = array<i32>} : memref<1x128xf32, #tpu.memory_space<vmem>>, vector<1x128xf32>,
    } else {
    }
    %c0 = arith.constant 0 : index
    %c0_1 = arith.constant 0 : index
    %c0_2 = arith.constant 0 : index
    %3 = vector.load %arg2[%c0, %c0_1, %c0_2] : memref<1x256x27xf32, #tpu.memory_space<vmem>>, vector<1x256x27xf32>
    %4 = vector.shape_cast %3 : vector<1x256x27xf32> to vector<256x27xf32>
    %c0_3 = arith.constant 0 : index
    %c0_4 = arith.constant 0 : index
    %5 = vector.load %arg3[%c0_3, %c0_4] : memref<27x128xf32, #tpu.memory_space<vmem>>, vector<27x128xf32>
    %cst = arith.constant dense<0.000000e+00> : vector<256x128xf32>
    %6 = tpu.matmul %4, %5, %cst {dimension_numbers = #tpu.dot_dimension_numbers<[1], [0], [0], [1], [0, 0, 1, 1], [], []>} : vector<256x27xf32>, vector<27x128xf32>, vector<256x128xf32> -> vector<256x128xf32>
    %c0_5 = arith.constant 0 : index
    %c0_6 = arith.constant 0 : index
    %7 = vector.load %arg4[%c0_5, %c0_6] : memref<1x128xf32, #tpu.memory_space<vmem>>, vector<1x128xf32>
    %8 = vector.broadcast %7 : vector<1x128xf32> to vector<256x128xf32>
    %9 = arith.addf %6, %8 : vector<256x128xf32>
    %cst_7 = arith.constant 0.000000e+00 : f32
    %10 = vector.broadcast %cst_7 : f32 to vector<256x128xf32>
    %11 = arith.maximumf %9, %10 : vector<256x128xf32>
    %12 = vector.shape_cast %11 : vector<256x128xf32> to vector<1x256x128xf32>
    %c0_8 = arith.constant 0 : index
    %c0_9 = arith.constant 0 : index
    %13 = vector.load %arg8[%c0_8, %c0_9] : memref<1x128xf32, #tpu.memory_space<vmem>>, vector<1x128xf32>
    %cst_10 = arith.constant dense<0.000000e+00> : vector<1x128xf32>
    %14 = vector.multi_reduction <add>, %12, %cst_10 [1] : vector<1x256x128xf32> to vector<1x128xf32>
    %15 = arith.addf %13, %14 : vector<1x128xf32>
    %c0_11 = arith.constant 0 : index
    %c0_12 = arith.constant 0 : index
    %16 = vector.load %arg8[%c0_11, %c0_12] : memref<1x128xf32, #tpu.memory_space<vmem>>, vector<1x128xf32>
    tpu.vector_store %arg8[%c0_11, %c0_12], %15 {strides = array<i32>} : memref<1x128xf32, #tpu.memory_space<vmem>>, vector<1x128xf32>,
    %c0_i32_13 = arith.constant 0 : i32
    %17 = arith.cmpi eq, %arg1, %c0_i32_13 : i32
    %18 = arith.extui %17 : i1 to i32
    %c0_i32_14 = arith.constant 0 : i32
    %19 = arith.cmpi ne, %18, %c0_i32_14 : i32
    scf.if %19 {
      %c0_15 = arith.constant 0 : index
      %c0_16 = arith.constant 0 : index
      %20 = vector.load %arg8[%c0_15, %c0_16] : memref<1x128xf32, #tpu.memory_space<vmem>>, vector<1x128xf32>
      %cst_17 = arith.constant 3.906250e-03 : f32
      %21 = vector.broadcast %cst_17 : f32 to vector<1x128xf32>
      %22 = arith.mulf %20, %21 : vector<1x128xf32>
      %c0_18 = arith.constant 0 : index
      %c0_19 = arith.constant 0 : index
      %23 = vector.load %arg5[%c0_18, %c0_19] : memref<128x384xf32, #tpu.memory_space<vmem>>, vector<128x384xf32>
      %cst_20 = arith.constant dense<0.000000e+00> : vector<1x384xf32>
      %24 = tpu.matmul %22, %23, %cst_20 {dimension_numbers = #tpu.dot_dimension_numbers<[1], [0], [0], [1], [0, 0, 1, 1], [], []>} : vector<1x128xf32>, vector<128x384xf32>, vector<1x384xf32> -> vector<1x384xf32>
      %c0_21 = arith.constant 0 : index
      %c0_22 = arith.constant 0 : index
      %25 = vector.load %arg6[%c0_21, %c0_22] : memref<1x384xf32, #tpu.memory_space<vmem>>, vector<1x384xf32>
      %26 = arith.addf %24, %25 : vector<1x384xf32>
      %27 = vector.shape_cast %26 : vector<1x384xf32> to vector<1x1x384xf32>
      %c0_23 = arith.constant 0 : index
      %c0_24 = arith.constant 0 : index
      %c0_25 = arith.constant 0 : index
      %28 = vector.load %arg7[%c0_23, %c0_24, %c0_25] : memref<1x1x384xf32, #tpu.memory_space<vmem>>, vector<1x1x384xf32>
      tpu.vector_store %arg7[%c0_23, %c0_24, %c0_25], %27 {strides = array<i32>} : memref<1x1x384xf32, #tpu.memory_space<vmem>>, vector<1x1x384xf32>,
    } else {
    }
    return
  }
  func.func @transform_0(%arg0: i32, %arg1: i32) -> (i32, i32, i32) {
    %c0_i32 = arith.constant 0 : i32
    %c0_i32_0 = arith.constant 0 : i32
    return %arg0, %arg1, %c0_i32 : i32, i32, i32
  }
  func.func @transform_1(%arg0: i32, %arg1: i32) -> (i32, i32) {
    %c0_i32 = arith.constant 0 : i32
    %c0_i32_0 = arith.constant 0 : i32
    %c0_i32_1 = arith.constant 0 : i32
    return %c0_i32, %c0_i32_0 : i32, i32
  }
  func.func @transform_2(%arg0: i32, %arg1: i32) -> (i32, i32) {
    %c0_i32 = arith.constant 0 : i32
    %c0_i32_0 = arith.constant 0 : i32
    %c0_i32_1 = arith.constant 0 : i32
    return %c0_i32, %c0_i32_0 : i32, i32
  }
  func.func @transform_3(%arg0: i32, %arg1: i32) -> (i32, i32) {
    %c0_i32 = arith.constant 0 : i32
    %c0_i32_0 = arith.constant 0 : i32
    %c0_i32_1 = arith.constant 0 : i32
    return %c0_i32, %c0_i32_0 : i32, i32
  }
  func.func @transform_4(%arg0: i32, %arg1: i32) -> (i32, i32) {
    %c0_i32 = arith.constant 0 : i32
    %c0_i32_0 = arith.constant 0 : i32
    %c0_i32_1 = arith.constant 0 : i32
    return %c0_i32, %c0_i32_0 : i32, i32
  }
  func.func @transform_5(%arg0: i32, %arg1: i32) -> (i32, i32, i32) {
    %c0_i32 = arith.constant 0 : i32
    %c0_i32_0 = arith.constant 0 : i32
    %c0_i32_1 = arith.constant 0 : i32
    return %arg0, %c0_i32, %c0_i32_0 : i32, i32, i32
  }
}

</mosaic_0001>

<bundles_post_ra>
// kernel: tpu_custom_call.1
= control target key start
LH: loop header
LB: loop body
LE: loop exit
PB: predicated region body
PF: predicated region fallthrough
CT: control target
= control target key end

     0   :  { %10 = vsyncpa [#allocation4], 0  ;;  %s1846_s0 = inlined_call_operand.vmem [shape: f32[2,256,27], index: 0, kind: input, shape index: {}]   ;;  %s1847_s1 = inlined_call_operand.vmem [shape: f32[27,128], index: 1, kind: input, shape index: {}]   ;;  %s1848_s2 = inlined_call_operand.vmem [shape: f32[1,128], index: 2, kind: input, shape index: {}]   ;;  %s1849_s3 = inlined_call_operand.vmem [shape: f32[128,384], index: 3, kind: input, shape index: {}]   ;;  %s1850_s4 = inlined_call_operand.vmem [shape: f32[1,384], index: 4, kind: input, shape index: {}]   ;;  %s1851_s5 = inlined_call_operand.hbm [shape: f32[2,1,384], index: 5, kind: output, shape index: {}]  }
   0x1   :  { %12 = vsyncpa [#allocation4 + $0x1], 0  ;;  %s1461_s18 = smov 0   ;;  %s1463_s19 = smov 0  }
   0x2   :  { %s1465_s20 = smov 0   ;;  %s1467_s21 = smov 0  }
   0x3   :  { %s1469_s22 = smov 0   ;;  %s1471_s23 = smov 0  }
   0x4 LB: > { %s1028_s24 = sadd.s32 4294967295, %s1423_s23   ;;  %s1029_s25 = sadd.s32 4294967294, %s1423_s23   ;;  %s1423_s23 = sphi %s1471_s23, %s18_s23   ;;  %s1419_s22 = sphi %s1469_s22, %s1858_s22   ;;  %s1415_s21 = sphi %s1467_s21, %s1857_s21   ;;  %s1411_s20 = sphi %s1465_s20, %s1856_s20   ;;  %s1407_s19 = sphi %s1463_s19, %s1855_s19   ;;  %s1403_s18 = sphi %s1461_s18, %s1854_s18  }
   0x5   : > { %s30_s26 = sadd.s32 1, %s1419_s22  ;;  %s149_s27 = sadd.s32 1, %s1411_s20 }
   0x6   : > { %p32_p0 = scmp.ge.s32.totalorder %s30_s26, 2  ;;  %p159_p1 = scmp.ne.s32.totalorder %s1411_s20, %s1407_s19 }
   0x7   : > { %p160_p2 = scmp.eq.s32.totalorder %s1028_s24, 1  ;;  %p165_p3 = scmp.ne.s32.totalorder %s1407_s19, %s1403_s18 }
   0x8   : > { %s1860_s26 = smov (%p32_p0, %s30_s26), 0  ;;  %p166_p5 = scmp.eq.s32.totalorder %s1029_s25, 1 }
   0x9   : > { %p1501_p4 = por %p160_p2, %p159_p1  ;;  %s146_s29 = ssub.s32 %s1419_s22, %s1860_s26 }
   0xa   : > { %p1032_p6 = scmp.ge.s32.totalorder %s1423_s23, 1  ;;  %p147_p7 = scmp.eq.s32.totalorder %s146_s29, 0 }
   0xb   : > { %p1508_p8 = por %p166_p5, %p165_p3  ;;  %p209_p9 = scmp.lt.s32.totalorder %s1423_s23, 3 }
   0xc   : > { %s1514_s6 = scalar_select %p147_p7, %s1411_s20, %s149_s27  }
   0xd   : > { %p210_p10 = pnand %p1032_p6, %p209_p9 }
   0xe   : > { %v288_v0 = vld [vmem:[%s1847_s1] sm:$0xff] (!%p210_p10)  ;;  %v289_v1 = vld [vmem:[%s1847_s1 + $0x8] sm:$0xff] (!%p210_p10)  ;;  %v290_v2 = vld [vmem:[%s1847_s1 + $0x10] sm:$0xff] (!%p210_p10)  ;;  %vm396_vm0 = vcmask (!%p210_p10), 1042432   ;;  %p242_p11 = scmp.lt.s32.totalorder (!%p210_p10), %s1415_s21, 1  ;;  %vm1425_vm1 = vmmov (!%p210_p10), 1  }
   0xf   : > { %213 = sbr.rel (%p210_p10) target bundleno = 599 (0x257), region = 40  ;;  %v1217_v3 = vpack.c.bf16 (!%p210_p10), %v289_v1, %v288_v0  ;;  %v291_v4 = vld [vmem:[%s1847_s1 + $0x18] sm:$0x7] (!%p210_p10)  ;;  %vm1222_vm2 = vmpackc.low (!%p210_p10), %vm396_vm0, %vm1425_vm1  ;;  %vm299_vm3 = vcmask (!%p210_p10), 220160   ;;  %v703_v38 = vld [vmem:[%s1849_s3 + $0x8] sm:$0xff] (!%p210_p10)  ;;  %v1426_v0 = vmov (!%p210_p10), 0.0  }
  0x10   : > { %v1221_v5 = vpack.c.bf16 (!%p210_p10), %v291_v4, %v290_v2  ;;  %v706_v39 = vld [vmem:[%s1849_s3 + $0x20] sm:$0xff] (!%p210_p10)  ;;  %v705_v42 = vld [vmem:[%s1849_s3 + $0x18] sm:$0xff] (!%p210_p10)  ;;  %v712_v45 = vld [vmem:[%s1849_s3 + $0x50] sm:$0xff] (!%p210_p10)  ;;  %255 = vst [vmem:[#allocation2] sm:$0x1] (!%p210_p10), %v1426_v0  ;;  %831 = vmatprep.mubr.f32.mxu1 (!%p210_p10), %v1426_v0  ;;  %vm1428_vm4 = vmmov (!%p210_p10), 0  }
  0x11   : > { %1218 = vmatprep.subr.bf16.mxu0 (!%p210_p10), %v1217_v3  ;;  %v1227_v40 = vpack.c.bf16 (!%p210_p10), %v706_v39, %v703_v38  ;;  %v702_v41 = vld [vmem:[%s1849_s3] sm:$0xff] (!%p210_p10)  ;;  %v709_v44 = vld [vmem:[%s1849_s3 + $0x38] sm:$0xff] (!%p210_p10)  ;;  %v708_v47 = vld [vmem:[%s1849_s3 + $0x30] sm:$0xff] (!%p210_p10)  ;;  %s1284_s17 = smul.u32 (!%p210_p10), 48, %s1415_s21 }
  0x12   : > { %1220 = vmatpush3.bf16.msra.mxu0 (!%p210_p10), %v1217_v3  ;;  %v1229_v43 = vpack.c.bf16 (!%p210_p10), %v705_v42, %v702_v41  ;;  %v1231_v46 = vpack.c.bf16 (!%p210_p10), %v712_v45, %v709_v44  ;;  %v711_v48 = vld [vmem:[%s1849_s3 + $0x48] sm:$0xff] (!%p210_p10)  ;;  %v718_v51 = vld [vmem:[%s1849_s3 + $0x80] sm:$0xff] (!%p210_p10)  ;;  %v717_v54 = vld [vmem:[%s1849_s3 + $0x78] sm:$0xff] (!%p210_p10) }
  0x13   : > { %1223 = vmatprep.subr.msk.bf16.mxu0 (!%p210_p10), %vm1222_vm2, %v1221_v5  ;;  %1228 = vmatprep.subr.bf16.mxu1 (!%p210_p10), %v1227_v40  ;;  %v1233_v49 = vpack.c.bf16 (!%p210_p10), %v711_v48, %v708_v47  ;;  %v715_v50 = vld [vmem:[%s1849_s3 + $0x68] sm:$0xff] (!%p210_p10)  ;;  %v714_v53 = vld [vmem:[%s1849_s3 + $0x60] sm:$0xff] (!%p210_p10)  ;;  %v721_v56 = vld [vmem:[%s1849_s3 + $0x98] sm:$0xff] (!%p210_p10)  ;;  %s1799_s7 = scalar_lea.hbm (!%p210_p10), %s1851_s5, %s1284_s17 }
  0x14   : > { %1230 = vmatpush1.bf16.msra.mxu1 (!%p210_p10), %v1229_v43  ;;  %v1235_v52 = vpack.c.bf16 (!%p210_p10), %v718_v51, %v715_v50  ;;  %v1237_v55 = vpack.c.bf16 (!%p210_p10), %v717_v54, %v714_v53  ;;  %v724_v57 = vld [vmem:[%s1849_s3 + $0xb0] sm:$0xff] (!%p210_p10)  ;;  %v723_v60 = vld [vmem:[%s1849_s3 + $0xa8] sm:$0xff] (!%p210_p10)  ;;  %v730_v63 = vld [vmem:[%s1849_s3 + $0xe0] sm:$0xff] (!%p210_p10) }
  0x15   : > { %1232 = vmatprep.subr.bf16.mxu1 (!%p210_p10), %v1231_v46  ;;  %v1239_v58 = vpack.c.bf16 (!%p210_p10), %v724_v57, %v721_v56  ;;  %v720_v59 = vld [vmem:[%s1849_s3 + $0x90] sm:$0xff] (!%p210_p10)  ;;  %v727_v62 = vld [vmem:[%s1849_s3 + $0xc8] sm:$0xff] (!%p210_p10)  ;;  %v726_v2 = vld [vmem:[%s1849_s3 + $0xc0] sm:$0xff] (!%p210_p10) }
  0x16   : > { %s243_s15 = scalar_select %p242_p11, %s1415_s21, 1  ;;  %1226 = vmatpush3.bf16.msk.msra.mxu0 %vm1222_vm2, %v1221_v5  ;;  %v1241_v61 = vpack.c.bf16 %v723_v60, %v720_v59  ;;  %v1243_v1 = vpack.c.bf16 %v730_v63, %v727_v62  ;;  %v729_v3 = vld [vmem:[%s1849_s3 + $0xd8] sm:$0xff] }
  0x17   : > { %v1245_v4 = vpack.c.bf16 %v729_v3, %v726_v2  ;;  %v733_v5 = vld [vmem:[%s1849_s3 + $0xf8] sm:$0xff]  ;;  %s1430_s21 = smov [#allocation3]  }
  0x18   : > { %s1072_s16 = sshll.u32 %s243_s15, 8  ;;  %1234 = vmatpush1.bf16.msra.mxu1 %v1233_v49  ;;  %s238_s15 = sand.u32 1, %s1407_s19  }
  0x19   : > { %s1533_s25 = scalar_lea.vmem %s1846_s0, %s1072_s16  ;;  %1236 = vmatprep.subr.bf16.mxu1 %v1235_v52  ;;  %s1283_s16 = smul.u32 3, %s238_s15 }
  0x1a   : > { %v256_v6 = vld [vmem:[%s1533_s25] sm:$0xff]  ;;  %v257_v7 = vld [vmem:[%s1533_s25 + $0x8] sm:$0xff]  ;;  %v258_v8 = vld [vmem:[%s1533_s25 + $0x10] sm:$0xff]  ;;  %s941_s8 = scalar_lea.sflag [#allocation4], %s238_s15  ;;  %s1349_s10 = sshll.u32 %s1430_s21, 4  ;;  %s1350_s10 = int_to_ptr.vmem [resolvable:$false] %s1349_s10 }
  0x1b   : > { %1134 = vmatprep.mubr.msk.f32.mxu0 %vm299_vm3, %v256_v6  ;;  %v259_v9 = vld [vmem:[%s1533_s25 + $0x18] sm:$0xff]  ;;  %v260_v10 = vld [vmem:[%s1533_s25 + $0x20] sm:$0xff]  ;;  %v261_v11 = vld [vmem:[%s1533_s25 + $0x28] sm:$0xff]  ;;  %s240_s24 = scalar_lea.vmem [#allocation3], %s1283_s16  ;;  %s1351_s11 = scalar_lea.vmem %s1350_s10, 96 }
  0x1c   : > { %1135 = vmatmul.mubr.msk.f32.vlgmr.msra.gmra.mrb[0].mxu0 %vm299_vm3, %v257_v7  ;;  %v262_v12 = vld [vmem:[%s1533_s25 + $0x30] sm:$0xff]  ;;  %v263_v13 = vld [vmem:[%s1533_s25 + $0x38] sm:$0xff]  ;;  %v264_v14 = vld [vmem:[%s1533_s25 + $0x40] sm:$0xff]  ;;  %1238 = vmatpush1.bf16.msra.mxu1 %v1237_v55 }
  0x1d   : > { %1137 = vmatprep.mubr.msk.f32.mxu0 %vm299_vm3, %v258_v8  ;;  %v265_v15 = vld [vmem:[%s1533_s25 + $0x48] sm:$0xff]  ;;  %v266_v16 = vld [vmem:[%s1533_s25 + $0x50] sm:$0xff]  ;;  %v267_v17 = vld [vmem:[%s1533_s25 + $0x58] sm:$0xff]  ;;  %1240 = vmatprep.subr.bf16.mxu1 %v1239_v58 }
  0x1e   : > { %v268_v18 = vld [vmem:[%s1533_s25 + $0x60] sm:$0xff]  ;;  %v269_v19 = vld [vmem:[%s1533_s25 + $0x68] sm:$0xff]  ;;  %v270_v20 = vld [vmem:[%s1533_s25 + $0x70] sm:$0xff] }
  0x1f   : > { %v271_v21 = vld [vmem:[%s1533_s25 + $0x78] sm:$0xff]  ;;  %v272_v22 = vld [vmem:[%s1533_s25 + $0x80] sm:$0xff]  ;;  %v273_v23 = vld [vmem:[%s1533_s25 + $0x88] sm:$0xff] }
  0x20   : > { %1138 = vmatmul.mubr.msk.f32.gmra.mrb[2].mxu0 %vm299_vm3, %v259_v9  ;;  %v274_v24 = vld [vmem:[%s1533_s25 + $0x90] sm:$0xff]  ;;  %v275_v25 = vld [vmem:[%s1533_s25 + $0x98] sm:$0xff]  ;;  %v276_v26 = vld [vmem:[%s1533_s25 + $0xa0] sm:$0xff]  ;;  %1242 = vmatpush1.bf16.msra.mxu1 %v1241_v61 }
  0x21   : > { %1140 = vmatprep.mubr.msk.f32.mxu0 %vm299_vm3, %v260_v10  ;;  %v277_v27 = vld [vmem:[%s1533_s25 + $0xa8] sm:$0xff]  ;;  %v278_v28 = vld [vmem:[%s1533_s25 + $0xb0] sm:$0xff]  ;;  %v279_v29 = vld [vmem:[%s1533_s25 + $0xb8] sm:$0xff]  ;;  %1244 = vmatprep.subr.bf16.mxu1 %v1243_v1 }
  0x22   : > { %v280_v30 = vld [vmem:[%s1533_s25 + $0xc0] sm:$0xff]  ;;  %v281_v31 = vld [vmem:[%s1533_s25 + $0xc8] sm:$0xff]  ;;  %v282_v32 = vld [vmem:[%s1533_s25 + $0xd0] sm:$0xff] }
  0x23   : > { %v283_v33 = vld [vmem:[%s1533_s25 + $0xd8] sm:$0xff]  ;;  %v284_v34 = vld [vmem:[%s1533_s25 + $0xe0] sm:$0xff]  ;;  %v285_v35 = vld [vmem:[%s1533_s25 + $0xe8] sm:$0xff] }
  0x24   : > { %1141 = vmatmul.mubr.msk.f32.gmra.mrb[4].mxu0 %vm299_vm3, %v261_v11  ;;  %v286_v36 = vld [vmem:[%s1533_s25 + $0xf0] sm:$0xff]  ;;  %v287_v37 = vld [vmem:[%s1533_s25 + $0xf8] sm:$0xff]  ;;  %1246 = vmatpush1.bf16.msra.mxu1 %v1245_v4  ;;  %v735_v9 = vld [vmem:[%s1849_s3 + $0x108] sm:$0xff]  ;;  %s955_s25 = sshll.u32 %s240_s24, 4  ;;  %s1801_s25 = int_to_ptr.vmem [resolvable:$true] %s955_s25 }
  0x25   : > { %1143 = vmatprep.mubr.msk.f32.mxu0 %vm299_vm3, %v262_v12  ;;  %v736_v6 = vld [vmem:[%s1849_s3 + $0x110] sm:$0xff]  ;;  %v739_v11 = vld [vmem:[%s1849_s3 + $0x128] sm:$0xff]  ;;  %v742_v12 = vld [vmem:[%s1849_s3 + $0x140] sm:$0xff]  ;;  %s1345_s9 = scalar_lea.vmem %s1801_s25, 48  ;;  %p1352_p1 = scmp.lt.s32.totalorder %s1801_s25, %s1350_s10 }
  0x26   : > { %v1247_v7 = vpack.c.bf16 %v736_v6, %v733_v5  ;;  %v732_v8 = vld [vmem:[%s1849_s3 + $0xf0] sm:$0xff]  ;;  %p1346_p12 = scmp.ne.s32.totalorder %s1801_s25, %s1345_s9  ;;  %p1353_p2 = scmp.lt.s32.totalorder %s1351_s11, %s1345_s9 }
  0x27   : > { %v1249_v10 = vpack.c.bf16 %v735_v9, %v732_v8 }
  0x28   : > { %1144 = vmatmul.mubr.msk.f32.gmra.mrb[6].mxu0 %vm299_vm3, %v263_v13  ;;  %v738_v13 = vld [vmem:[%s1849_s3 + $0x120] sm:$0xff]  ;;  %1248 = vmatprep.subr.bf16.mxu1 %v1247_v7  ;;  %p1347_p13 = pnand %p1346_p12, %p1501_p4  ;;  %p1354_p3 = por %p1353_p2, %p1352_p1 }
  0x29   : > { %1146 = vmatprep.mubr.msk.f32.mxu0 %vm299_vm3, %v264_v14  ;;  %v1251_v14 = vpack.c.bf16 %v742_v12, %v739_v11  ;;  %1250 = vmatpush1.bf16.msra.mxu1 %v1249_v10 }
  0x2a   : > { %p1348_p0 = pneg %p1347_p13 }
  0x2b   : > { %1252 = vmatprep.subr.bf16.mxu1 %v1251_v14 }
  0x2c   : > { %1147 = vmatmul.mubr.msk.f32.gmra.mrb[8].mxu0 %vm299_vm3, %v265_v15  ;;  %v741_v15 = vld [vmem:[%s1849_s3 + $0x138] sm:$0xff]  ;;  %p1355_p5 = pnand %p1354_p3, %p1348_p0 }
  0x2d   : > { %1149 = vmatprep.mubr.msk.f32.mxu0 %vm299_vm3, %v266_v16  ;;  %v745_v16 = vld [vmem:[%s1849_s3 + $0x158] sm:$0xff] }
  0x30   : > { %1150 = vmatmul.mubr.msk.f32.gmra.mrb[10].mxu0 %vm299_vm3, %v267_v17  ;;  %v748_v17 = vld [vmem:[%s1849_s3 + $0x170] sm:$0xff] }
  0x31   : > { %1152 = vmatprep.mubr.msk.f32.mxu0 %vm299_vm3, %v268_v18  ;;  %v1253_v18 = vpack.c.bf16 %v741_v15, %v738_v13 }
  0x33   : > { %1254 = vmatpush1.bf16.msra.mxu1 %v1253_v18 }
  0x34   : > { %1153 = vmatmul.mubr.msk.f32.gmra.mrb[12].mxu0 %vm299_vm3, %v269_v19  ;;  %v1255_v19 = vpack.c.bf16 %v748_v17, %v745_v16 }
  0x35   : > { %1155 = vmatprep.mubr.msk.f32.mxu0 %vm299_vm3, %v270_v20  ;;  %v744_v20 = vld [vmem:[%s1849_s3 + $0x150] sm:$0xff] }
  0x36   : > { %1256 = vmatprep.subr.bf16.mxu1 %v1255_v19 }
  0x38   : > { %1156 = vmatmul.mubr.msk.f32.gmra.mrb[14].mxu0 %vm299_vm3, %v271_v21  ;;  %v747_v21 = vld [vmem:[%s1849_s3 + $0x168] sm:$0xff] }
  0x39   : > { %1158 = vmatprep.mubr.msk.f32.mxu0 %vm299_vm3, %v272_v22  ;;  %v1257_v22 = vpack.c.bf16 %v747_v21, %v744_v20 }
  0x3b   : > { %1258 = vmatpush1.bf16.msra.mxu1 %v1257_v22 }
  0x3c   : > { %1159 = vmatmul.mubr.msk.f32.gmra.mrb[16].mxu0 %vm299_vm3, %v273_v23  ;;  %v1427_v23 = vmov 0.0|0.0  }
  0x3d   : > { %1161 = vmatprep.mubr.msk.f32.mxu0 %vm299_vm3, %v274_v24  ;;  %1259 = vmatprep.subr.bf16.mxu1 %v1427_v23  ;;  %v1701_v24 = vld [vmem:[%s1848_s2] ss:$0 sm:$0xff] }
  0x40   : > { %1162 = vmatmul.mubr.msk.f32.gmra.mrb[18].mxu0 %vm299_vm3, %v275_v25 }
  0x41   : > { %1164 = vmatprep.mubr.msk.f32.mxu0 %vm299_vm3, %v276_v26 }
  0x44   : > { %1165 = vmatmul.mubr.msk.f32.gmra.mrb[20].mxu0 %vm299_vm3, %v277_v27 }
  0x45   : > { %1167 = vmatprep.mubr.msk.f32.mxu0 %vm299_vm3, %v278_v28 }
  0x48   : > { %1168 = vmatmul.mubr.msk.f32.gmra.mrb[22].mxu0 %vm299_vm3, %v279_v29 }
  0x49   : > { %1170 = vmatprep.mubr.msk.f32.mxu0 %vm299_vm3, %v280_v30 }
  0x4c   : > { %1171 = vmatmul.mubr.msk.f32.gmra.mrb[24].mxu0 %vm299_vm3, %v281_v31 }
  0x4d   : > { %1173 = vmatprep.mubr.msk.f32.mxu0 %vm299_vm3, %v282_v32 }
  0x50   : > { %1174 = vmatmul.mubr.msk.f32.gmra.mrb[26].mxu0 %vm299_vm3, %v283_v33 }
  0x51   : > { %1176 = vmatprep.mubr.msk.f32.mxu0 %vm299_vm3, %v284_v34 }
  0x54   : > { %1177 = vmatmul.mubr.msk.f32.gmra.mrb[28].mxu0 %vm299_vm3, %v285_v35 }
  0x55   : > { %1179 = vmatprep.mubr.msk.f32.mxu0 %vm299_vm3, %v286_v36 }
  0x58   : > { %1180 = vmatmul.mubr.msk.f32.gmra.mrb[30].mxu0 %vm299_vm3, %v287_v37 }
  0xef   : > { %v1136_v25 = vpop.f32.mrb[0].mxu0 }
  0xf0   : > { %v472_v26 = vadd.f32 %v1136_v25, %v1701_v24  ;;  %v466_v27 = vpop.f32.mrb[1].mxu0 }
  0xf1   : > { %v467_v28 = vadd.f32 %v1701_v24, %v466_v27 }
  0xf2   : > { %v626_v29 = vmax.f32 %v472_v26, 0.0 }
  0xf3   : > { %v625_v30 = vmax.f32 %v467_v28, 0.0  ;;  %v1139_v31 = vpop.f32.mrb[2].mxu0 }
  0xf4   : > { %v476_v32 = vpop.f32.mrb[3].mxu0  ;;  %v482_v34 = vadd.f32 %v1139_v31, %v1701_v24 }
  0xf5   : > { %v658_v33 = vadd.f32 %v626_v29, %v625_v30  ;;  %v477_v35 = vadd.f32 %v1701_v24, %v476_v32 }
  0xf6   : > { %v628_v39 = vmax.f32 %v482_v34, 0.0 }
  0xf7   : > { %v627_v36 = vmax.f32 %v477_v35, 0.0  ;;  %v1142_v37 = vpop.f32.mrb[4].mxu0 }
  0xf8   : > { %v486_v38 = vpop.f32.mrb[5].mxu0  ;;  %v492_v41 = vadd.f32 %v1142_v37, %v1701_v24 }
  0xf9   : > { %v659_v40 = vadd.f32 %v658_v33, %v627_v36  ;;  %v487_v42 = vadd.f32 %v1701_v24, %v486_v38 }
  0xfa   : > { %v630_v47 = vmax.f32 %v492_v41, 0.0 }
  0xfb   : > { %v629_v43 = vmax.f32 %v487_v42, 0.0  ;;  %v660_v44 = vadd.f32 %v659_v40, %v628_v39  ;;  %v1145_v45 = vpop.f32.mrb[6].mxu0 }
  0xfc   : > { %v496_v46 = vpop.f32.mrb[7].mxu0  ;;  %v502_v49 = vadd.f32 %v1145_v45, %v1701_v24 }
  0xfd   : > { %v661_v48 = vadd.f32 %v660_v44, %v629_v43  ;;  %v497_v50 = vadd.f32 %v1701_v24, %v496_v46 }
  0xfe   : > { %v632_v55 = vmax.f32 %v502_v49, 0.0 }
  0xff   : > { %v631_v51 = vmax.f32 %v497_v50, 0.0  ;;  %v662_v52 = vadd.f32 %v661_v48, %v630_v47  ;;  %v1148_v53 = vpop.f32.mrb[8].mxu0 }
 0x100   : > { %v506_v54 = vpop.f32.mrb[9].mxu0  ;;  %v512_v57 = vadd.f32 %v1148_v53, %v1701_v24 }
 0x101   : > { %v663_v56 = vadd.f32 %v662_v52, %v631_v51  ;;  %v507_v58 = vadd.f32 %v1701_v24, %v506_v54 }
 0x102   : > { %v634_v63 = vmax.f32 %v512_v57, 0.0 }
 0x103   : > { %v633_v59 = vmax.f32 %v507_v58, 0.0  ;;  %v664_v60 = vadd.f32 %v663_v56, %v632_v55  ;;  %v1151_v61 = vpop.f32.mrb[10].mxu0 }
 0x104   : > { %v516_v62 = vpop.f32.mrb[11].mxu0  ;;  %v522_v2 = vadd.f32 %v1151_v61, %v1701_v24 }
 0x105   : > { %v665_v1 = vadd.f32 %v664_v60, %v633_v59  ;;  %v517_v3 = vadd.f32 %v1701_v24, %v516_v62 }
 0x106   : > { %v636_v8 = vmax.f32 %v522_v2, 0.0 }
 0x107   : > { %v635_v4 = vmax.f32 %v517_v3, 0.0  ;;  %v666_v5 = vadd.f32 %v665_v1, %v634_v63  ;;  %v1154_v6 = vpop.f32.mrb[12].mxu0 }
 0x108   : > { %v526_v7 = vpop.f32.mrb[13].mxu0  ;;  %v532_v10 = vadd.f32 %v1154_v6, %v1701_v24 }
 0x109   : > { %v667_v9 = vadd.f32 %v666_v5, %v635_v4  ;;  %v527_v11 = vadd.f32 %v1701_v24, %v526_v7 }
 0x10a   : > { %v638_v16 = vmax.f32 %v532_v10, 0.0 }
 0x10b   : > { %v637_v12 = vmax.f32 %v527_v11, 0.0  ;;  %v668_v13 = vadd.f32 %v667_v9, %v636_v8  ;;  %v1157_v14 = vpop.f32.mrb[14].mxu0 }
 0x10c   : > { %v536_v15 = vpop.f32.mrb[15].mxu0  ;;  %v542_v18 = vadd.f32 %v1157_v14, %v1701_v24 }
 0x10d   : > { %v669_v17 = vadd.f32 %v668_v13, %v637_v12  ;;  %v537_v19 = vadd.f32 %v1701_v24, %v536_v15 }
 0x10e   : > { %v640_v26 = vmax.f32 %v542_v18, 0.0 }
 0x10f   : > { %v639_v20 = vmax.f32 %v537_v19, 0.0  ;;  %v670_v21 = vadd.f32 %v669_v17, %v638_v16  ;;  %v1160_v22 = vpop.f32.mrb[16].mxu0 }
 0x110   : > { %v546_v25 = vpop.f32.mrb[17].mxu0  ;;  %v552_v28 = vadd.f32 %v1160_v22, %v1701_v24 }
 0x111   : > { %v671_v27 = vadd.f32 %v670_v21, %v639_v20  ;;  %v547_v29 = vadd.f32 %v1701_v24, %v546_v25 }
 0x112   : > { %v642_v34 = vmax.f32 %v552_v28, 0.0 }
 0x113   : > { %v641_v30 = vmax.f32 %v547_v29, 0.0  ;;  %v672_v31 = vadd.f32 %v671_v27, %v640_v26  ;;  %v1163_v32 = vpop.f32.mrb[18].mxu0 }
 0x114   : > { %v556_v33 = vpop.f32.mrb[19].mxu0  ;;  %v562_v36 = vadd.f32 %v1163_v32, %v1701_v24 }
 0x115   : > { %v673_v35 = vadd.f32 %v672_v31, %v641_v30  ;;  %v557_v37 = vadd.f32 %v1701_v24, %v556_v33 }
 0x116   : > { %v644_v42 = vmax.f32 %v562_v36, 0.0 }
 0x117   : > { %v643_v38 = vmax.f32 %v557_v37, 0.0  ;;  %v674_v39 = vadd.f32 %v673_v35, %v642_v34  ;;  %v1166_v40 = vpop.f32.mrb[20].mxu0  ;;  %v657_v35 = vld [vmem:[#allocation2] sm:$0x1] }
 0x118   : > { %v566_v41 = vpop.f32.mrb[21].mxu0  ;;  %v572_v44 = vadd.f32 %v1166_v40, %v1701_v24 }
 0x119   : > { %v675_v43 = vadd.f32 %v674_v39, %v643_v38  ;;  %v567_v45 = vadd.f32 %v1701_v24, %v566_v41  ;;  %v704_v38 = vld [vmem:[%s1849_s3 + $0x10] sm:$0xff] }
 0x11a   : > { %v646_v50 = vmax.f32 %v572_v44, 0.0 }
 0x11b   : > { %v645_v46 = vmax.f32 %v567_v45, 0.0  ;;  %v676_v47 = vadd.f32 %v675_v43, %v644_v42  ;;  %v1169_v48 = vpop.f32.mrb[22].mxu0  ;;  %v710_v42 = vld [vmem:[%s1849_s3 + $0x40] sm:$0xff]  ;;  %v713_v43 = vld [vmem:[%s1849_s3 + $0x58] sm:$0xff]  ;;  %v716_v45 = vld [vmem:[%s1849_s3 + $0x70] sm:$0xff] }
 0x11c   : > { %v576_v49 = vpop.f32.mrb[23].mxu0  ;;  %v582_v52 = vadd.f32 %v1169_v48, %v1701_v24  ;;  %v1263_v44 = vpack.c.bf16 %v713_v43, %v710_v42  ;;  %v722_v48 = vld [vmem:[%s1849_s3 + $0xa0] sm:$0xff] }
 0x11d   : > { %v677_v51 = vadd.f32 %v676_v47, %v645_v46  ;;  %v577_v53 = vadd.f32 %v1701_v24, %v576_v49  ;;  %v719_v46 = vld [vmem:[%s1849_s3 + $0x88] sm:$0xff] }
 0x11e   : > { %v648_v58 = vmax.f32 %v582_v52, 0.0  ;;  %v1266_v47 = vpack.c.bf16 %v719_v46, %v716_v45 }
 0x11f   : > { %v647_v54 = vmax.f32 %v577_v53, 0.0  ;;  %v678_v55 = vadd.f32 %v677_v51, %v646_v50  ;;  %v1172_v56 = vpop.f32.mrb[24].mxu0  ;;  %v728_v50 = vld [vmem:[%s1849_s3 + $0xd0] sm:$0xff]  ;;  %v731_v51 = vld [vmem:[%s1849_s3 + $0xe8] sm:$0xff]  ;;  %v734_v53 = vld [vmem:[%s1849_s3 + $0x100] sm:$0xff] }
 0x120   : > { %v586_v57 = vpop.f32.mrb[25].mxu0  ;;  %v592_v60 = vadd.f32 %v1172_v56, %v1701_v24  ;;  %v1272_v52 = vpack.c.bf16 %v731_v51, %v728_v50  ;;  %v740_v56 = vld [vmem:[%s1849_s3 + $0x130] sm:$0xff] }
 0x121   : > { %v679_v59 = vadd.f32 %v678_v55, %v647_v54  ;;  %v587_v61 = vadd.f32 %v1701_v24, %v586_v57  ;;  %v737_v54 = vld [vmem:[%s1849_s3 + $0x118] sm:$0xff]  ;;  %v743_v57 = vld [vmem:[%s1849_s3 + $0x148] sm:$0xff] }
 0x122   : > { %v650_v3 = vmax.f32 %v592_v60, 0.0  ;;  %v1275_v55 = vpack.c.bf16 %v737_v54, %v734_v53  ;;  %v749_v60 = vld [vmem:[%s1849_s3 + $0x178] sm:$0xff] }
 0x123   : > { %v649_v62 = vmax.f32 %v587_v61, 0.0  ;;  %v680_v63 = vadd.f32 %v679_v59, %v648_v58  ;;  %v1175_v1 = vpop.f32.mrb[26].mxu0  ;;  %v1278_v58 = vpack.c.bf16 %v743_v57, %v740_v56  ;;  %v746_v59 = vld [vmem:[%s1849_s3 + $0x160] sm:$0xff] }
 0x124   : > { %v596_v2 = vpop.f32.mrb[27].mxu0  ;;  %v602_v5 = vadd.f32 %v1175_v1, %v1701_v24  ;;  %v1281_v61 = vpack.c.bf16 %v749_v60, %v746_v59 }
 0x125   : > { %v681_v4 = vadd.f32 %v680_v63, %v649_v62  ;;  %v597_v6 = vadd.f32 %v1701_v24, %v596_v2  ;;  %v752_v62 = vlaneseq  ;;  %v750_v2 = vld [vmem:[%s1850_s4] sm:$0x7] }
 0x126   : > { %v652_v11 = vmax.f32 %v602_v5, 0.0 }
 0x127   : > { %v651_v7 = vmax.f32 %v597_v6, 0.0  ;;  %v682_v8 = vadd.f32 %v681_v4, %v650_v3  ;;  %v1178_v9 = vpop.f32.mrb[28].mxu0  ;;  %v753_v63 = vshrl.u32 %v752_v62, 7  ;;  %vm937_vm5 = vcmp.lt.s32.totalorder %v752_v62, 384 }
 0x128   : > { %v606_v10 = vpop.f32.mrb[29].mxu0  ;;  %v612_v13 = vadd.f32 %v1178_v9, %v1701_v24 }
 0x129   : > { %v683_v12 = vadd.f32 %v682_v8, %v651_v7  ;;  %v607_v14 = vadd.f32 %v1701_v24, %v606_v10  ;;  %v754_v1 = vsub.s32 0, %v753_v63  ;;  %v758_v3 = vsub.s32 1, %v753_v63 }
 0x12a   : > { %v654_v19 = vmax.f32 %v612_v13, 0.0 }
 0x12b   : > { %v653_v15 = vmax.f32 %v607_v14, 0.0  ;;  %v684_v16 = vadd.f32 %v683_v12, %v652_v11  ;;  %v1181_v17 = vpop.f32.mrb[30].mxu0  ;;  %v755_v4 = vrot.slane %v750_v2, %v754_v1  ;;  %v759_v5 = vrot.slane %v750_v2, %v758_v3 }
 0x12c   : > { %v616_v18 = vpop.f32.mrb[31].mxu0  ;;  %v622_v21 = vadd.f32 %v1181_v17, %v1701_v24  ;;  %v762_v12 = vsub.s32 2, %v753_v63 }
 0x12d   : > { %v685_v20 = vadd.f32 %v684_v16, %v653_v15  ;;  %v617_v22 = vadd.f32 %v1701_v24, %v616_v18  ;;  %v707_v24 = vld [vmem:[%s1849_s3 + $0x28] sm:$0xff] }
 0x12e   : > { %v656_v27 = vmax.f32 %v622_v21, 0.0  ;;  %v1260_v40 = vpack.c.bf16 %v707_v24, %v704_v38  ;;  %v763_v14 = vrot.slane %v750_v2, %v762_v12 }
 0x12f   : > { %v655_v25 = vmax.f32 %v617_v22, 0.0  ;;  %v686_v26 = vadd.f32 %v685_v20, %v654_v19 }
 0x131   : > { %v687_v28 = vadd.f32 %v686_v26, %v655_v25 }
 0x133   : > { %v688_v29 = vadd.f32 %v687_v28, %v656_v27 }
 0x135   : > { %v689_v30 = vrot.slane %v688_v29, 4 }
 0x137   : > { %v690_v31 = vadd.f32 %v689_v30, %v688_v29 }
 0x139   : > { %v691_v32 = vrot.slane %v690_v31, 2 }
 0x13b   : > { %v692_v33 = vadd.f32 %v691_v32, %v690_v31 }
 0x13d   : > { %v693_v34 = vrot.slane %v692_v33, 1 }
 0x13f   : > { %v694_v36 = vadd.f32 %v693_v34, %v692_v33 }
 0x141   : > { %v695_v37 = vadd.f32 %v694_v36, %v657_v35 }
 0x143   : > { %696 = vst [vmem:[#allocation2] sm:$0x1] %v695_v37 }
 0x14a   : > { %v700_v39 = vld [vmem:[#allocation2] sm:$0x1] }
 0x14b   : > { %v701_v41 = vmul.f32 0.00390625, %v700_v39 }
 0x14d   : > { %832 = vmatmul.mubr.f32.vlgmr.msra.gmra.mrb[0].mxu1 %v701_v41 }
 0x14e   : > { %1261 = vmatpush3.bf16.msra.mxu1 %v1260_v40  ;;  %1214 = vmatprep.mubr.msk.f32.mxu1 %vm1428_vm4, %v1426_v0  ;;  %v725_v0 = vld [vmem:[%s1849_s3 + $0xb8] sm:$0xff] }
 0x14f   : > { %1262 = vmatprep.subr.bf16.mxu1 %v1427_v23  ;;  %v1269_v49 = vpack.c.bf16 %v725_v0, %v722_v48 }
 0x152   : > { %1264 = vmatpush3.bf16.msra.mxu1 %v1263_v44 }
 0x153   : > { %1265 = vmatprep.subr.bf16.mxu1 %v1427_v23 }
 0x156   : > { %1267 = vmatpush3.bf16.msra.mxu1 %v1266_v47 }
 0x157   : > { %1268 = vmatprep.subr.bf16.mxu1 %v1427_v23 }
 0x15a   : > { %1270 = vmatpush3.bf16.msra.mxu1 %v1269_v49 }
 0x15b   : > { %1271 = vmatprep.subr.bf16.mxu1 %v1427_v23 }
 0x15e   : > { %1273 = vmatpush3.bf16.msra.mxu1 %v1272_v52 }
 0x15f   : > { %1274 = vmatprep.subr.bf16.mxu1 %v1427_v23 }
 0x162   : > { %1276 = vmatpush3.bf16.msra.mxu1 %v1275_v55 }
 0x163   : > { %1277 = vmatprep.subr.bf16.mxu1 %v1427_v23 }
 0x166   : > { %1279 = vmatpush3.bf16.msra.mxu1 %v1278_v58 }
 0x167   : > { %1280 = vmatprep.subr.bf16.mxu1 %v1427_v23  ;;  %v1429_v23 = vmov 1966171168  }
 0x168   : > { %v913_v11 = vunpack.c.l.s4 %v1429_v23 }
 0x16a   : > { %1282 = vmatpush3.bf16.msra.mxu1 %v1281_v61  ;;  %v914_v13 = vunpack.c.0.s8 %v913_v11 }
 0x16c   : > { %v917_v15 = vsub.s32 %v914_v13, %v753_v63 }
 0x16d   : > { %1215 = vmatmul.mubr.f32.vlgmr.msra.gmra.mrb[2].mxu1 %v701_v41 }
 0x220   : > { %v833_v6 = vpop.f32.mrb[0].mxu1 }
 0x221   : > { %v834_v7 = vadd.f32 %v833_v6, %v755_v4  ;;  %v835_v8 = vpop.f32.mrb[1].mxu1 }
 0x222   : > { %v836_v9 = vadd.f32 %v835_v8, %v759_v5 }
 0x224   : > { %v911_v10 = vcombine.low %v834_v7, %v836_v9 }
 0x226   : > { %v918_v19 = vrot.slane %v911_v10, %v917_v15 }
 0x240   : > { %v904_v16 = vpop.f32.mrb[2].mxu1 }
 0x241   : > { %v905_v17 = vadd.f32 %v904_v16, %v763_v14  ;;  %v1216_v18 = vpop.f32.mrb[3].mxu1 }
 0x243   : > { %v925_v20 = vrot.slane %v905_v17, %v917_v15 }
 0x245   : > { %v926_v21 = vcombine.low %v918_v19, %v925_v20 }
 0x247   : > { %v933_v22 = vrot.slane %v926_v21, %v917_v15 }
 0x249   : > { %939 = vst.msk [vmem:[%s240_s24] sm:$0x7] %vm937_vm5, %v933_v22 }
 0x24a   : > { %1358 = shalt.err (!%p1355_p5)
}
 0x24b   : > { %s1359_s12 = scalar_lea.hbm %s1799_s7, 48  ;;  %s1363_s15 = scalar_lea.hbm %s1851_s5, 96 }
 0x24c   : > { %p1360_p6 = scmp.ne.s32.totalorder %s1799_s7, %s1359_s12  ;;  %p1364_p10 = scmp.lt.u32.totalorder %s1799_s7, %s1851_s5 }
 0x24d   : > { %p1365_p11 = scmp.lt.u32.totalorder %s1363_s15, %s1359_s12  ;;  %p1367_p13 = scmp.lt.u32.totalorder %s1359_s12, %s1799_s7 }
 0x24e   : > { %p1361_p7 = pnand %p1360_p6, %p1501_p4 }
 0x24f   : > { %p1366_p12 = por %p1365_p11, %p1364_p10 }
 0x250   : > { %p1362_p9 = pneg %p1361_p7 }
 0x251   : > { %p1368_p0 = por %p1367_p13, %p1366_p12 }
 0x253   : > { %p1369_p1 = pnand %p1368_p0, %p1362_p9 }
 0x255   : > { %1372 = shalt.err (!%p1369_p1)
}
 0x256   : > { %1285 = dma.vmem_to_hbm [thread:$0]  (%p1501_p4), %s1801_s25, 48, %s1799_s7, %s941_s8  }
 0x257 PF: > { %p1291_p2 = scmp.ge.s32.totalorder %s1423_s23, 2  ;;  %s967_s24 = sand.u32 1, %s1403_s18  }
 0x258   : > { %s968_s27 = scalar_lea.sflag [#allocation4], %s967_s24 }
 0x259   : > { %p1288_p3 = pnand %p1291_p2, %p1508_p8 }
 0x25b   : > { %1398 = dma.done.wait (!%p1288_p3), %s968_s27, 48  }
 0x25c   : > { %1400 = vsyncadd (!%p1288_p3), %s968_s27, 4294967248  ;;  %s18_s23 = sadd.s32 1, %s1423_s23   ;;  %s1854_s18 = smov %s1407_s19 }
 0x25d   : > { %p15_p5 = scmp.ge.s32.totalorder %s18_s23, 4   ;;  %s1855_s19 = smov %s1411_s20 }
 0x25e   : > { %s1856_s20 = smov %s1514_s6  ;;  %s1857_s21 = smov %s1419_s22 }
 0x25f   : > { %s1858_s22 = smov %s1860_s26  ;;  %17 = sbr.rel (!%p15_p5) target bundleno = 4 (0x4), region = 83 }
 0x266   :  { %973 = vsyncpa [#allocation4], 1 }
 0x267   :  { %975 = vsyncpa [#allocation4 + $0x1], 1 }

</bundles_post_ra>
